<compile_context>
chip_gen: v7x
topology: tpu7x:2x2x1
jax: 0.10.0
libtpu: 0.0.40
codegen_flags: <defaults>
</compile_context>

<pallas_src>
import math

import jax
import jax.numpy as jnp
from jax import lax
from jax.experimental import pallas as pl
from jax.experimental.pallas import tpu as pltpu

DOC_WEIGHT = 0.4
LN_EPS = 1e-6


def ext_layer_kernel(x_ref, m_ref, pe_ref, gw_ref, scal_ref, out_ref):
    # x_ref: (TB, TN, D) top_vecs tile      m_ref: (TB, TN) mask tile
    # pe_ref: (1, TN, D) doc_weight*pe      gw_ref: (1, D) gamma*w
    # scal_ref: SMEM (4,) = [1-dw, dw, sum(gamma*w), sum(beta*w)+b]
    x = x_ref[...].astype(jnp.float32)
    m = m_ref[...].astype(jnp.float32)
    pe = pe_ref[...].astype(jnp.float32)
    gw = gw_ref[...].astype(jnp.float32)

    one_minus_dw = scal_ref[0]
    dw = scal_ref[1]
    sg = scal_ref[2]
    bb = scal_ref[3]

    # Single fused pass over the (TB, TN, D) tile.
    coef = one_minus_dw + dw * m                       # (TB, TN)
    blended = x * coef[:, :, None] + pe                # (TB, TN, D)

    inv_d = 1.0 / x.shape[-1]
    mean = jnp.sum(blended, axis=-1) * inv_d           # (TB, TN)
    ex2 = jnp.sum(blended * blended, axis=-1) * inv_d  # (TB, TN)
    var = ex2 - mean * mean
    inv_std = lax.rsqrt(var + LN_EPS)

    dot_gw = jnp.sum(blended * gw[None, :, :], axis=-1)  # (TB, TN), XLU reduce
    logits = inv_std * (dot_gw - mean * sg) + bb
    out_ref[...] = (jax.nn.sigmoid(logits) * m).astype(out_ref.dtype)


def ext_layer_forward(top_vecs, mask, pe, gamma, beta, w, b,
                      doc_weight=DOC_WEIGHT):
    B, N, D = top_vecs.shape

    # Host-side algebraic folding (tiny O(D) work, done once per call).
    pe_s = (doc_weight * pe).astype(jnp.float32)               # (1, N, D)
    gw = (gamma * w).astype(jnp.float32)                       # (1, D)
    sg = jnp.sum(gw)
    bb = jnp.sum(beta.astype(jnp.float32) * w.astype(jnp.float32)) + b[0, 0]
    scalars = jnp.stack([jnp.float32(1.0 - doc_weight),
                         jnp.float32(doc_weight),
                         sg.astype(jnp.float32),
                         bb.astype(jnp.float32)])               # (4,) -> SMEM

    # Tile sizes: satisfy the (8,128) rule (or full extent) and stay well under
    # v7x's 64 MiB VMEM with double-buffering at production d_model.
    TB = B if B <= 8 else 8            # rows per tile (3rd-from-last: no constraint)
    TN = N if N <= 256 else 256        # multiple of 128 when tiled -> lane-dense out
    grid = (pl.cdiv(N, TN), pl.cdiv(B, TB))   # batch innermost => pe/gw reuse

    return pl.pallas_call(
        ext_layer_kernel,
        out_shape=jax.ShapeDtypeStruct((B, N), jnp.float32),
        grid=grid,
        in_specs=[
            pl.BlockSpec((TB, TN, D), lambda n, b: (b, n, 0)),   # top_vecs
            pl.BlockSpec((TB, TN), lambda n, b: (b, n)),         # mask
            pl.BlockSpec((1, TN, D), lambda n, b: (0, n, 0)),    # dw * pe (b-invariant)
            pl.BlockSpec((1, D), lambda n, b: (0, 0)),           # gamma * w
            pl.BlockSpec(memory_space=pltpu.MemorySpace.SMEM),   # folded scalars
        ],
        out_specs=pl.BlockSpec((TB, TN), lambda n, b: (b, n)),
        compiler_params=pltpu.CompilerParams(
            dimension_semantics=("parallel", "parallel")),
    )(top_vecs, mask, pe_s, gw, scalars)


def positional_encoding(n_sents, dim):
    position = jnp.arange(n_sents, dtype=jnp.float32)[:, None]
    div_term = jnp.exp(
        jnp.arange(0, dim, 2, dtype=jnp.float32) * -(math.log(10000.0) / dim))
    ang = position * div_term                                # (N, D/2)
    pe = jnp.zeros((n_sents, dim), jnp.float32)
    pe = pe.at[:, 0::2].set(jnp.sin(ang))
    pe = pe.at[:, 1::2].set(jnp.cos(ang))
    return pe[None]                                          # (1, N, D)


def reference_forward(top_vecs, mask, pe, gamma, beta, w, b):
    x = top_vecs * mask[:, :, None] + pe
    x = (1.0 - DOC_WEIGHT) * top_vecs + DOC_WEIGHT * x
    mean = x.mean(-1, keepdims=True)
    var = ((x - mean) ** 2).mean(-1, keepdims=True)
    xn = (x - mean) / jnp.sqrt(var + LN_EPS) * gamma[0] + beta[0]
    logits = jnp.sum(xn * w[0], axis=-1) + b[0, 0]
    return jax.nn.sigmoid(logits) * mask


if __name__ == "__main__":
    B, N, D = 2, 8, 32   # batch, n_sents, d_model (toy shapes)

    key = jax.random.PRNGKey(0)
    k_x, k_m, k_g, k_b, k_w, k_bias = jax.random.split(key, 6)

    top_vecs = jax.random.normal(k_x, (B, N, D), dtype=jnp.float32)
    mask = (jax.random.uniform(k_m, (B, N)) > 0.25).astype(jnp.float32)
    pe = positional_encoding(N, D)

    # LayerNorm affine params (deterministic, slightly perturbed from identity)
    gamma = (1.0 + 0.05 * jax.random.normal(k_g, (1, D))).astype(jnp.float32)
    beta = (0.05 * jax.random.normal(k_b, (1, D))).astype(jnp.float32)

    # wo: Linear(d_model, 1) -- uniform init like nn.Linear
    bound = 1.0 / math.sqrt(D)
    w = jax.random.uniform(k_w, (1, D), minval=-bound, maxval=bound).astype(jnp.float32)
    b = jax.random.uniform(k_bias, (1, 1), minval=-bound, maxval=bound).astype(jnp.float32)

    out = ext_layer_forward(top_vecs, mask, pe, gamma, beta, w, b)
    out = jax.block_until_ready(out)

    ref = reference_forward(top_vecs, mask, pe, gamma, beta, w, b)
    assert out.shape == (B, N)
    # Slightly looser tolerance than before: kernel uses the folded
    # E[x^2]-mean^2 variance and rsqrt, vs the centered form in the reference.
    assert jnp.allclose(out, ref, atol=1e-4, rtol=1e-4), "mismatch vs pure-JAX reference"

    print("KERNEL_OK")
</pallas_src>

<mosaic_0001>
module attributes {stable_mosaic.version = 11 : i64} {
  func.func @ext_layer_kernel(%arg0: i32, %arg1: i32, %arg2: memref<2x8x32xf32, #tpu.memory_space<vmem>>, %arg3: memref<2x8xf32, #tpu.memory_space<vmem>>, %arg4: memref<1x8x32xf32, #tpu.memory_space<vmem>>, %arg5: memref<1x32xf32, #tpu.memory_space<vmem>>, %arg6: memref<4xf32, #tpu.memory_space<smem>>, %arg7: memref<2x8xf32, #tpu.memory_space<vmem>>) attributes {dimension_semantics = [#tpu.dimension_semantics<parallel>, #tpu.dimension_semantics<parallel>], iteration_bounds = array<i64: 1, 1>, scalar_prefetch = 0 : i64, scratch_operands = 0 : i64, tpu.core_type = #tpu.core_type<tc>, window_params = [{transform_indices = @transform_0, window_bounds = array<i64: 2, 8, 32>}, {transform_indices = @transform_1, window_bounds = array<i64: 2, 8>}, {transform_indices = @transform_2, window_bounds = array<i64: 1, 8, 32>}, {pipeline_mode = #tpu.pipeline_mode<synchronous>, transform_indices = @transform_3, window_bounds = array<i64: 1, 32>}, {transform_indices = @transform_4, window_bounds = array<i64: 4>}, {transform_indices = @transform_5, window_bounds = array<i64: 2, 8>}]} {
    %c0 = arith.constant 0 : index
    %c0_0 = arith.constant 0 : index
    %c0_1 = arith.constant 0 : index
    %0 = vector.load %arg2[%c0, %c0_0, %c0_1] : memref<2x8x32xf32, #tpu.memory_space<vmem>>, vector<2x8x32xf32>
    %c0_2 = arith.constant 0 : index
    %c0_3 = arith.constant 0 : index
    %1 = vector.load %arg3[%c0_2, %c0_3] : memref<2x8xf32, #tpu.memory_space<vmem>>, vector<2x8xf32>
    %c0_4 = arith.constant 0 : index
    %c0_5 = arith.constant 0 : index
    %c0_6 = arith.constant 0 : index
    %2 = vector.load %arg4[%c0_4, %c0_5, %c0_6] : memref<1x8x32xf32, #tpu.memory_space<vmem>>, vector<1x8x32xf32>
    %c0_7 = arith.constant 0 : index
    %c0_8 = arith.constant 0 : index
    %3 = vector.load %arg5[%c0_7, %c0_8] : memref<1x32xf32, #tpu.memory_space<vmem>>, vector<1x32xf32>
    %c0_9 = arith.constant 0 : index
    %4 = memref.load %arg6[%c0_9] : memref<4xf32, #tpu.memory_space<smem>>
    %c1 = arith.constant 1 : index
    %5 = memref.load %arg6[%c1] : memref<4xf32, #tpu.memory_space<smem>>
    %c2 = arith.constant 2 : index
    %6 = memref.load %arg6[%c2] : memref<4xf32, #tpu.memory_space<smem>>
    %c3 = arith.constant 3 : index
    %7 = memref.load %arg6[%c3] : memref<4xf32, #tpu.memory_space<smem>>
    %8 = vector.broadcast %5 : f32 to vector<2x8xf32>
    %9 = arith.mulf %8, %1 : vector<2x8xf32>
    %10 = vector.broadcast %4 : f32 to vector<2x8xf32>
    %11 = arith.addf %10, %9 : vector<2x8xf32>
    %12 = vector.shape_cast %11 : vector<2x8xf32> to vector<2x8x1xf32>
    %13 = vector.broadcast %12 : vector<2x8x1xf32> to vector<2x8x32xf32>
    %14 = arith.mulf %0, %13 : vector<2x8x32xf32>
    %15 = vector.broadcast %2 : vector<1x8x32xf32> to vector<2x8x32xf32>
    %16 = arith.addf %14, %15 : vector<2x8x32xf32>
    %cst = arith.constant dense<0.000000e+00> : vector<2x8xf32>
    %17 = vector.multi_reduction <add>, %16, %cst [2] : vector<2x8x32xf32> to vector<2x8xf32>
    %cst_10 = arith.constant 3.125000e-02 : f32
    %18 = vector.broadcast %cst_10 : f32 to vector<2x8xf32>
    %19 = arith.mulf %17, %18 : vector<2x8xf32>
    %20 = arith.mulf %16, %16 : vector<2x8x32xf32>
    %cst_11 = arith.constant dense<0.000000e+00> : vector<2x8xf32>
    %21 = vector.multi_reduction <add>, %20, %cst_11 [2] : vector<2x8x32xf32> to vector<2x8xf32>
    %cst_12 = arith.constant 3.125000e-02 : f32
    %22 = vector.broadcast %cst_12 : f32 to vector<2x8xf32>
    %23 = arith.mulf %21, %22 : vector<2x8xf32>
    %24 = arith.mulf %19, %19 : vector<2x8xf32>
    %25 = arith.subf %23, %24 : vector<2x8xf32>
    %cst_13 = arith.constant 9.99999997E-7 : f32
    %26 = vector.broadcast %cst_13 : f32 to vector<2x8xf32>
    %27 = arith.addf %25, %26 : vector<2x8xf32>
    %28 = math.rsqrt %27 : vector<2x8xf32>
    %29 = vector.shape_cast %3 : vector<1x32xf32> to vector<1x1x32xf32>
    %30 = vector.broadcast %29 : vector<1x1x32xf32> to vector<2x8x32xf32>
    %31 = arith.mulf %16, %30 : vector<2x8x32xf32>
    %cst_14 = arith.constant dense<0.000000e+00> : vector<2x8xf32>
    %32 = vector.multi_reduction <add>, %31, %cst_14 [2] : vector<2x8x32xf32> to vector<2x8xf32>
    %33 = vector.broadcast %6 : f32 to vector<2x8xf32>
    %34 = arith.mulf %19, %33 : vector<2x8xf32>
    %35 = arith.subf %32, %34 : vector<2x8xf32>
    %36 = arith.mulf %28, %35 : vector<2x8xf32>
    %37 = vector.broadcast %7 : f32 to vector<2x8xf32>
    %38 = arith.addf %36, %37 : vector<2x8xf32>
    %39 = arith.negf %38 : vector<2x8xf32>
    %40 = math.exp %39 : vector<2x8xf32>
    %cst_15 = arith.constant 1.000000e+00 : f32
    %41 = vector.broadcast %cst_15 : f32 to vector<2x8xf32>
    %42 = arith.addf %41, %40 : vector<2x8xf32>
    %43 = arith.divf %41, %42 : vector<2x8xf32>
    %44 = arith.mulf %43, %1 : vector<2x8xf32>
    %c0_16 = arith.constant 0 : index
    %c0_17 = arith.constant 0 : index
    %45 = vector.load %arg7[%c0_16, %c0_17] : memref<2x8xf32, #tpu.memory_space<vmem>>, vector<2x8xf32>
    tpu.vector_store %arg7[%c0_16, %c0_17], %44 {strides = array<i32>} : memref<2x8xf32, #tpu.memory_space<vmem>>, vector<2x8xf32>,
    return
  }
  func.func @transform_0(%arg0: i32, %arg1: i32) -> (i32, i32, i32) {
    %c0_i32 = arith.constant 0 : i32
    %c0_i32_0 = arith.constant 0 : i32
    return %arg1, %arg0, %c0_i32 : i32, i32, i32
  }
  func.func @transform_1(%arg0: i32, %arg1: i32) -> (i32, i32) {
    %c0_i32 = arith.constant 0 : i32
    return %arg1, %arg0 : i32, i32
  }
  func.func @transform_2(%arg0: i32, %arg1: i32) -> (i32, i32, i32) {
    %c0_i32 = arith.constant 0 : i32
    %c0_i32_0 = arith.constant 0 : i32
    %c0_i32_1 = arith.constant 0 : i32
    return %c0_i32, %arg0, %c0_i32_0 : i32, i32, i32
  }
  func.func @transform_3(%arg0: i32, %arg1: i32) -> (i32, i32) {
    %c0_i32 = arith.constant 0 : i32
    %c0_i32_0 = arith.constant 0 : i32
    %c0_i32_1 = arith.constant 0 : i32
    return %c0_i32, %c0_i32_0 : i32, i32
  }
  func.func @transform_4(%arg0: i32, %arg1: i32) -> i32 {
    %c0_i32 = arith.constant 0 : i32
    %c0_i32_0 = arith.constant 0 : i32
    return %c0_i32 : i32
  }
  func.func @transform_5(%arg0: i32, %arg1: i32) -> (i32, i32) {
    %c0_i32 = arith.constant 0 : i32
    return %arg1, %arg0 : i32, i32
  }
}

</mosaic_0001>

<bundles_post_ra>
// kernel: tpu_custom_call.1
= control target key start
LH: loop header
LB: loop body
LE: loop exit
PB: predicated region body
PF: predicated region fallthrough
CT: control target
= control target key end

     0   :  { %10 = vsyncpa [#allocation3], 0  ;;  %s421_s0 = inlined_call_operand.hbm [shape: f32[2,8,32], index: 0, kind: input, shape index: {}]   ;;  %s422_s1 = inlined_call_operand.vmem [shape: f32[2,8], index: 1, kind: input, shape index: {}]   ;;  %s423_s2 = inlined_call_operand.hbm [shape: f32[1,8,32], index: 2, kind: input, shape index: {}]   ;;  %s424_s3 = inlined_call_operand.vmem [shape: f32[1,32], index: 3, kind: input, shape index: {}]   ;;  %s425_s4 = inlined_call_operand.vmem [shape: f32[4], index: 4, kind: input, shape index: {}]   ;;  %s426_s5 = inlined_call_operand.hbm [shape: f32[2,8], index: 5, kind: output, shape index: {}]  }
   0x1   :  { %11 = vsyncpa [#allocation7], 0 }
   0x2   :  { %12 = vsyncpa [#allocation5], 0 }
   0x3   :  { %13 = vsyncpa [#allocation4], 0  ;;  %s326_s18 = smov [#allocation2]   ;;  %s240_s22 = scalar_lea.hbm %s421_s0, 256 }
   0x4   :  { %s19_s19 = sshll.u32 %s326_s18, 4  ;;  %p241_p0 = scmp.ne.s32.totalorder %s421_s0, %s240_s22  ;;  %s20_s19 = int_to_ptr.vmem [resolvable:$true] %s19_s19 }
   0x5   :  { %p244_p1 = scmp.lt.u32.totalorder %s240_s22, %s421_s0 }
   0x7   :  { %p246_p2 = pnand %p244_p1, %p241_p0 }
   0x9   :  { %249 = shalt.err (!%p246_p2)
}
   0xa   :  { %s250_s27 = scalar_lea.vmem %s20_s19, 256  ;;  %p255_p4 = scmp.lt.s32.totalorder %s20_s19, %s20_s19 }
   0xb   :  { %p251_p3 = scmp.ne.s32.totalorder %s20_s19, %s250_s27  ;;  %p256_p5 = scmp.lt.s32.totalorder %s250_s27, %s250_s27 }
   0xd   :  { %p257_p6 = por %p256_p5, %p255_p4 }
   0xf   :  { %p258_p7 = pnand %p257_p6, %p251_p3 }
  0x11   :  { %261 = shalt.err (!%p258_p7)
}
  0x12   :  { %s327_s28 = smov 128   ;;  %s328_s29 = smov 8  }
  0x13   :  { %25 = dma.hbm_to_vmem [thread:$0]  %s421_s0, 256, %s20_s19, [#allocation3], %s327_s28, %s327_s28, %s328_s29  }
  0x14   :  { %s329_s7 = smov [#allocation6]   ;;  %s46_s11 = sshll.u32 %s425_s4, 4  ;;  %s47_s11 = int_to_ptr.vmem [resolvable:$true] %s46_s11 }
  0x15   :  { %s34_s8 = sshll.u32 %s329_s7, 4  ;;  %s262_s14 = scalar_lea.hbm %s423_s2, 128  ;;  %s35_s8 = int_to_ptr.vmem [resolvable:$true] %s34_s8 }
  0x16   :  { %p263_p8 = scmp.ne.s32.totalorder %s423_s2, %s262_s14  ;;  %p266_p9 = scmp.lt.u32.totalorder %s262_s14, %s423_s2 }
  0x18   :  { %p268_p10 = pnand %p266_p9, %p263_p8 }
  0x1a   :  { %271 = shalt.err (!%p268_p10)
}
  0x1b   :  { %s272_s0 = scalar_lea.vmem %s35_s8, 128  ;;  %p277_p12 = scmp.lt.s32.totalorder %s35_s8, %s35_s8 }
  0x1c   :  { %p273_p11 = scmp.ne.s32.totalorder %s35_s8, %s272_s0  ;;  %p278_p13 = scmp.lt.s32.totalorder %s272_s0, %s272_s0 }
  0x1e   :  { %p279_p0 = por %p278_p13, %p277_p12 }
  0x20   :  { %p280_p1 = pnand %p279_p0, %p273_p11 }
  0x22   :  { %283 = shalt.err (!%p280_p1)
}
  0x23   :  { %37 = dma.hbm_to_vmem [thread:$0]  %s423_s2, 128, %s35_s8, [#allocation7]  }
  0x24   :  { %s284_s20 = scalar_lea.vmem %s47_s11, 16  ;;  %p289_p3 = scmp.lt.s32.totalorder %s47_s11, %s47_s11 }
  0x25   :  { %p285_p2 = scmp.ne.s32.totalorder %s47_s11, %s284_s20  ;;  %p290_p4 = scmp.lt.s32.totalorder %s284_s20, %s284_s20 }
  0x27   :  { %p291_p5 = por %p290_p4, %p289_p3 }
  0x29   :  { %p292_p6 = pnand %p291_p5, %p285_p2 }
  0x2b   :  { %295 = shalt.err (!%p292_p6)
}
  0x2c   :  { %s330_s21 = smov [#allocation8]  }
  0x2d   :  { %49 = dma.vmem_to_smem %s47_s11, 16, %s330_s21, [#allocation5]  }
  0x2e   :  { %318 = dma.done.wait [#allocation3], 256  }
  0x2f   :  { %319 = vsyncadd [#allocation3], 4294967040 }
  0x30   :  { %320 = dma.done.wait [#allocation7], 128  }
  0x31   :  { %321 = vsyncadd [#allocation7], 4294967168 }
  0x32   :  { %322 = dma.done.wait [#allocation5], 16  }
  0x33   :  { %323 = vsyncadd [#allocation5], 4294967280 }
  0x34   :  { %59 = sfence }
  0x35   :  { %s65_s22 = sld [smem:[#allocation8]]  ;;  %s213_s23 = sld [smem:[#allocation8 + $0x1]]  ;;  %v73_v0 = vlaneseq  ;;  %v62_v2 = vld [vmem:[%s422_s1] sm:$0x3]  ;;  %v63_v14 = vld [vmem:[#allocation6] sm:$0xff]  ;;  %v61_v17 = vld [vmem:[#allocation2 + $0x8] sm:$0xff] }
  0x36   :  { %v60_v13 = vld [vmem:[#allocation2] sm:$0xff]  ;;  %vm91_vm0 = vcmask 261120   ;;  %v331_v33 = vmov 0   ;;  %s215_s26 = sld [smem:[#allocation8 + $0x3]]  ;;  %s332_s27 = smov [#allocation9]   ;;  %vm191_vm1 = vcmask 1041409  }
  0x37   :  { %v391_v1 = vshrl.u32 %v73_v0, 7  ;;  %v216_v27 = vld [vmem:[%s424_s3] ss:$0 sm:$0xff]  ;;  %226 = vset.pattern.permute.xlu0 %v331_v33  ;;  %227 = vset.pattern.permute.xlu1 %v331_v33  ;;  %s214_s3 = sld [smem:[#allocation8 + $0x2]]  ;;  %s202_s28 = sshll.u32 %s332_s27, 4  ;;  %vm194_vm2 = vcmask 58368   ;;  %s203_s28 = int_to_ptr.vmem [resolvable:$true] %s202_s28 }
  0x38   :  { %s296_s29 = scalar_lea.vmem %s203_s28, 32  ;;  %p301_p8 = scmp.lt.s32.totalorder %s203_s28, %s203_s28 }
  0x39   :  { %v75_v6 = vsub.s32 0, %v391_v1  ;;  %v82_v8 = vsub.s32 1, %v391_v1  ;;  %p297_p7 = scmp.ne.s32.totalorder %s203_s28, %s296_s29  ;;  %p302_p9 = scmp.lt.s32.totalorder %s296_s29, %s296_s29 }
  0x3b   :  { %v69_v3 = vstv %s213_s23  ;;  %v71_v4 = vstv %s65_s22  ;;  %v158_v11 = vrot.slane %v62_v2, %v75_v6  ;;  %v165_v12 = vrot.slane %v62_v2, %v82_v8  ;;  %p303_p10 = por %p302_p9, %p301_p8 }
  0x3c   :  { %v70_v5 = vmul.f32 %v69_v3, %v62_v2  ;;  %v139_v53 = vstv %s215_s26 }
  0x3d   :  { %v132_v48 = vstv %s214_s3  ;;  %p304_p11 = pnand %p303_p10, %p297_p7 }
  0x3e   :  { %v72_v7 = vadd.f32 %v71_v4, %v70_v5 }
  0x40   :  { %v76_v9 = vrot.slane %v72_v7, %v75_v6  ;;  %v83_v10 = vrot.slane %v72_v7, %v82_v8 }
  0x42   :  { %78 = vbcast.lane.b32.xlu0 %v76_v9, 256 }
  0x46   :  { %85 = vbcast.lane.b32.xlu0 %v83_v10, 256 }
  0xb4   :  { %v79_v15 = vpop.permute.xlu0 %78 }
  0xb5   :  { %v87_v16 = vmul.f32 %v79_v15, %v60_v13 }
  0xb7   :  { %v89_v18 = vadd.f32 %v87_v16, %v63_v14 }
  0xb8   :  { %v86_v19 = vpop.permute.xlu0 %85 }
  0xb9   :  { %v88_v20 = vmul.f32 %v86_v19, %v61_v17  ;;  %v92_v21 = vsel %vm91_vm0, %v89_v18, 0.0  ;;  %v100_v22 = vmul.f32 %v89_v18, %v89_v18  ;;  %v124_v29 = vmul.f32 %v216_v27, %v89_v18 }
  0xba   :  { %93 = vadd.xlane.f32.xlu1 %v92_v21 }
  0xbb   :  { %v90_v23 = vadd.f32 %v88_v20, %v63_v14  ;;  %v102_v24 = vsel %vm91_vm0, %v100_v22, 0.0  ;;  %v126_v30 = vsel %vm91_vm0, %v124_v29, 0.0 }
  0xbc   :  { %103 = vadd.xlane.f32.xlu0 %v102_v24 }
  0xbd   :  { %v95_v25 = vsel %vm91_vm0, %v90_v23, 0.0  ;;  %v101_v26 = vmul.f32 %v90_v23, %v90_v23  ;;  %v125_v31 = vmul.f32 %v216_v27, %v90_v23 }
  0xbe   :  { %96 = vadd.xlane.f32.xlu1 %v95_v25 }
  0xbf   :  { %v105_v28 = vsel %vm91_vm0, %v101_v26, 0.0  ;;  %v129_v32 = vsel %vm91_vm0, %v125_v31, 0.0 }
  0xc2   :  { %106 = vadd.xlane.f32.xlu1 %v105_v28 }
  0xc6   :  { %127 = vadd.xlane.f32.xlu1 %v126_v30 }
  0xca   :  { %130 = vadd.xlane.f32.xlu1 %v129_v32 }
  0xdb   :  { %160 = vbcast.lane.b32.xlu1 %v158_v11, 256 }
  0xdf   :  { %167 = vbcast.lane.b32.xlu1 %v165_v12, 256  ;;  %v182_v12 = vand.u32 127, %v73_v0 }
  0xe1   :  { %v185_v13 = vsub.s32 %v182_v12, %v391_v1 }
 0x147   :  { %v94_v34 = vpop.xlane.xlu1 %93 }
 0x148   :  { %v98_v35 = vmul.f32 0.03125, %v94_v34 }
 0x149   :  { %v104_v36 = vpop.xlane.xlu0 %103 }
 0x14a   :  { %v110_v37 = vmul.f32 %v98_v35, %v98_v35  ;;  %v108_v38 = vmul.f32 0.03125, %v104_v36  ;;  %v133_v50 = vmul.f32 %v132_v48, %v98_v35 }
 0x14b   :  { %v97_v39 = vpop.xlane.xlu1 %96 }
 0x14c   :  { %v112_v40 = vsub.f32 %v108_v38, %v110_v37  ;;  %v99_v41 = vmul.f32 0.03125, %v97_v39 }
 0x14e   :  { %v114_v42 = vadd.f32 1e-06, %v112_v40  ;;  %v111_v44 = vmul.f32 %v99_v41, %v99_v41  ;;  %v134_v57 = vmul.f32 %v132_v48, %v99_v41 }
 0x14f   :  { %v107_v43 = vpop.xlane.xlu1 %106 }
 0x150   :  { %228 = vrsqrt.f32 %v114_v42  ;;  %v109_v45 = vmul.f32 0.03125, %v107_v43 }
 0x152   :  { %v113_v46 = vsub.f32 %v109_v45, %v111_v44 }
 0x153   :  { %v128_v49 = vpop.xlane.xlu1 %127 }
 0x154   :  { %v115_v47 = vadd.f32 1e-06, %v113_v46  ;;  %v135_v51 = vsub.f32 %v128_v49, %v133_v50 }
 0x156   :  { %230 = vrsqrt.f32 %v115_v47 }
 0x157   :  { %v131_v55 = vpop.xlane.xlu1 %130 }
 0x158   :  { %v136_v59 = vsub.f32 %v131_v55, %v134_v57 }
 0x15a   :  { %v229_v52 = vpop.eup %228 }
 0x15b   :  { %v137_v54 = vmul.f32 %v229_v52, %v135_v51  ;;  %v161_v6 = vpop.permute.xlu1 %160 }
 0x15d   :  { %v140_v56 = vadd.f32 %v139_v53, %v137_v54 }
 0x15f   :  { %v217_v58 = vmul.f32 -1.442695, %v140_v56  ;;  %v168_v9 = vpop.permute.xlu1 %167 }
 0x160   :  { %v231_v60 = vpop.eup %230 }
 0x161   :  { %232 = vpow2.f32 %v217_v58  ;;  %v138_v61 = vmul.f32 %v231_v60, %v136_v59 }
 0x163   :  { %v141_v62 = vadd.f32 %v139_v53, %v138_v61 }
 0x165   :  { %v218_v63 = vmul.f32 -1.442695, %v141_v62 }
 0x167   :  { %234 = vpow2.f32 %v218_v63 }
 0x16b   :  { %v233_v2 = vpop.eup %232 }
 0x16c   :  { %v148_v3 = vadd.f32 1.0, %v233_v2 }
 0x16e   :  { %236 = vrcp.f32 %v148_v3 }
 0x171   :  { %v235_v4 = vpop.eup %234 }
 0x172   :  { %v149_v5 = vadd.f32 1.0, %v235_v4 }
 0x174   :  { %238 = vrcp.f32 %v149_v5 }
 0x178   :  { %v237_v7 = vpop.eup %236 }
 0x179   :  { %v171_v8 = vmul.f32 %v237_v7, %v161_v6 }
 0x17b   :  { %176 = vperm.xlu0 %226, %v171_v8  }
 0x17e   :  { %v239_v10 = vpop.eup %238 }
 0x17f   :  { %v172_v11 = vmul.f32 %v239_v10, %v168_v9 }
 0x181   :  { %179 = vperm.xlu1 %227, %v172_v11  }
 0x1fa   :  { %v177_v14 = vpop.permute.xlu0 %176 }
 0x1fb   :  { %v186_v16 = vrot.slane %v177_v14, %v185_v13 }
 0x200   :  { %v180_v15 = vpop.permute.xlu1 %179 }
 0x201   :  { %v190_v17 = vrot.slane %v180_v15, %v185_v13 }
 0x203   :  { %v192_v18 = vsel %vm191_vm1, %v190_v17, %v186_v16 }
 0x204   :  { %195 = vst.msk [vmem:[#allocation9] sm:$0x3] %vm194_vm2, %v192_v18 }
 0x205   :  { %307 = shalt.err (!%p304_p11)
}
 0x206   :  { %s308_s7 = scalar_lea.hbm %s426_s5, 32 }
 0x207   :  { %p309_p12 = scmp.ne.s32.totalorder %s426_s5, %s308_s7  ;;  %p312_p13 = scmp.lt.u32.totalorder %s308_s7, %s426_s5 }
 0x209   :  { %p314_p0 = pnand %p312_p13, %p309_p12 }
 0x20b   :  { %317 = shalt.err (!%p314_p0)
}
 0x20c   :  { %205 = dma.vmem_to_hbm [thread:$0]  %s203_s28, 32, %s426_s5, [#allocation4]  }
 0x20d   :  { %324 = dma.done.wait [#allocation4], 32  }
 0x20e   :  { %325 = vsyncadd [#allocation4], 4294967264 }
 0x20f   :  { %209 = vsyncpa [#allocation3], 1 }
 0x210   :  { %210 = vsyncpa [#allocation7], 1 }
 0x211   :  { %211 = vsyncpa [#allocation4], 1 }
 0x212   :  { %212 = vsyncpa [#allocation5], 1 }

</bundles_post_ra>
